<compile_context>
chip_gen: v6e
topology: v6e:2x2x1
jax: 0.10.0
libtpu: 0.0.40
codegen_flags: <defaults>
</compile_context>

<pallas_src>
import jax
import jax.numpy as jnp
from jax.experimental import pallas as pl
from jax.experimental.pallas import tpu as pltpu

LN_EPS = 1e-5


def _round_up(x, m):
    return ((x + m - 1) // m) * m


def _cdiv(a, b):
    return (a + b - 1) // b


# ------------------------------ kernel ------------------------------
def ffn_kernel(x_ref, w1_ref, w2_ref, g_ref, b_ref, o_ref):
    x = x_ref[...]                                   # (TM, D) f32 rows
    # MXU matmuls in bf16 with f32 accumulation.
    h = jnp.dot(x.astype(jnp.bfloat16), w1_ref[...],
                preferred_element_type=jnp.float32)  # (TM, D_FF)
    h = jnp.maximum(h, 0.0)
    y = jnp.dot(h.astype(jnp.bfloat16), w2_ref[...],
                preferred_element_type=jnp.float32)  # (TM, D)
    # Residual + LayerNorm in f32 on the VPU (biased variance, eps=1e-5,
    # matching torch.nn.LayerNorm).
    z = y + x
    mean = jnp.mean(z, axis=-1, keepdims=True)
    var = jnp.mean((z - mean) ** 2, axis=-1, keepdims=True)
    o_ref[...] = (z - mean) * jax.lax.rsqrt(var + LN_EPS) * g_ref[...] + b_ref[...]


# ------------------------------ wrapper ------------------------------
def _choose_row_tile(rows):
    """Pick rows-per-grid-step: as big as possible (<=256) but >=2 steps when
    the problem is large enough so both v7x TensorCores are used."""
    r8 = _round_up(rows, 8)
    if r8 <= 8:
        return r8
    return min(256, _round_up(_cdiv(r8, 2), 8))


def poswise_ffn(x, w1, w2, gamma, beta):
    """x: (B, S, D) f32; w1: (D, D_FF); w2: (D_FF, D); gamma/beta: (D,)."""
    B, S, D = x.shape
    D_FF = w1.shape[1]
    R = B * S

    # Collapse (B, S, D) -> (R, D): tall MXU operands, single launch.
    x2 = x.reshape(R, D).astype(jnp.float32)

    TM = _choose_row_tile(R)
    R_pad = _round_up(R, TM)
    if R_pad != R:
        x2 = jnp.pad(x2, ((0, R_pad - R), (0, 0)))   # zero rows, sliced off below

    w1_bf = w1.astype(jnp.bfloat16)
    w2_bf = w2.astype(jnp.bfloat16)
    g2 = gamma.reshape(1, D).astype(jnp.float32)
    b2 = beta.reshape(1, D).astype(jnp.float32)

    # TODO(synk): with d_model=32 the output lane width is 32/128; a fully
    # lane-dense (.., k*128) store layout would need an in-kernel relayout that
    # costs more than it saves at these sizes.
    out = pl.pallas_call(
        ffn_kernel,
        out_shape=jax.ShapeDtypeStruct((R_pad, D), jnp.float32),
        grid=(R_pad // TM,),
        in_specs=[
            pl.BlockSpec((TM, D), lambda i: (i, 0)),       # x rows (tiled)
            pl.BlockSpec((D, D_FF), lambda i: (0, 0)),     # W1 (resident)
            pl.BlockSpec((D_FF, D), lambda i: (0, 0)),     # W2 (resident)
            pl.BlockSpec((1, D), lambda i: (0, 0)),        # gamma
            pl.BlockSpec((1, D), lambda i: (0, 0)),        # beta
        ],
        out_specs=pl.BlockSpec((TM, D), lambda i: (i, 0)),
        compiler_params=pltpu.CompilerParams(
            dimension_semantics=("parallel",)),
    )(x2, w1_bf, w2_bf, g2, b2)

    return out[:R].reshape(B, S, D)


# ------------------------------ pure-JAX reference ------------------------------
def poswise_ffn_ref(x, w1, w2, gamma, beta):
    h = jnp.maximum(jnp.dot(x, w1), 0.0)
    z = jnp.dot(h, w2) + x
    mean = jnp.mean(z, axis=-1, keepdims=True)
    var = jnp.mean((z - mean) ** 2, axis=-1, keepdims=True)
    return (z - mean) * jax.lax.rsqrt(var + LN_EPS) * gamma + beta


if __name__ == "__main__":
    key = jax.random.PRNGKey(0)
    kx, k1, k2, kg, kb = jax.random.split(key, 5)

    B, S, D, D_FF = 2, 8, 32, 64
    x = jax.random.normal(kx, (B, S, D), jnp.float32)
    w1 = jax.random.normal(k1, (D, D_FF), jnp.float32) * 0.1
    w2 = jax.random.normal(k2, (D_FF, D), jnp.float32) * 0.1
    gamma = 1.0 + 0.1 * jax.random.normal(kg, (D,), jnp.float32)
    beta = 0.1 * jax.random.normal(kb, (D,), jnp.float32)

    out = poswise_ffn(x, w1, w2, gamma, beta)
    out = jax.block_until_ready(out)

    ref = poswise_ffn_ref(x, w1, w2, gamma, beta)

    assert out.shape == (B, S, D)
    assert bool(jnp.all(jnp.isfinite(out)))
    # bf16 matmul operands (f32 accumulation) -> loose-but-tight-enough tolerance
    assert float(jnp.max(jnp.abs(out - ref))) < 5e-2
    print("KERNEL_OK")
</pallas_src>

<mosaic_0001>
module attributes {stable_mosaic.version = 11 : i64} {
  func.func @ffn_kernel(%arg0: i32, %arg1: memref<8x32xf32, #tpu.memory_space<vmem>>, %arg2: memref<32x64xbf16, #tpu.memory_space<vmem>>, %arg3: memref<64x32xbf16, #tpu.memory_space<vmem>>, %arg4: memref<1x32xf32, #tpu.memory_space<vmem>>, %arg5: memref<1x32xf32, #tpu.memory_space<vmem>>, %arg6: memref<8x32xf32, #tpu.memory_space<vmem>>) attributes {dimension_semantics = [#tpu.dimension_semantics<parallel>], iteration_bounds = array<i64: 2>, scalar_prefetch = 0 : i64, scratch_operands = 0 : i64, tpu.core_type = #tpu.core_type<tc>, window_params = [{transform_indices = @transform_0, window_bounds = array<i64: 8, 32>}, {pipeline_mode = #tpu.pipeline_mode<synchronous>, transform_indices = @transform_1, window_bounds = array<i64: 32, 64>}, {pipeline_mode = #tpu.pipeline_mode<synchronous>, transform_indices = @transform_2, window_bounds = array<i64: 64, 32>}, {pipeline_mode = #tpu.pipeline_mode<synchronous>, transform_indices = @transform_3, window_bounds = array<i64: 1, 32>}, {pipeline_mode = #tpu.pipeline_mode<synchronous>, transform_indices = @transform_4, window_bounds = array<i64: 1, 32>}, {transform_indices = @transform_5, window_bounds = array<i64: 8, 32>}]} {
    %c0 = arith.constant 0 : index
    %c0_0 = arith.constant 0 : index
    %0 = vector.load %arg1[%c0, %c0_0] : memref<8x32xf32, #tpu.memory_space<vmem>>, vector<8x32xf32>
    %1 = arith.truncf %0 : vector<8x32xf32> to vector<8x32xbf16>
    %c0_1 = arith.constant 0 : index
    %c0_2 = arith.constant 0 : index
    %2 = vector.load %arg2[%c0_1, %c0_2] : memref<32x64xbf16, #tpu.memory_space<vmem>>, vector<32x64xbf16>
    %cst = arith.constant dense<0.000000e+00> : vector<8x64xf32>
    %3 = tpu.matmul %1, %2, %cst {dimension_numbers = #tpu.dot_dimension_numbers<[1], [0], [0], [1], [0, 0, 1, 1], [], []>} : vector<8x32xbf16>, vector<32x64xbf16>, vector<8x64xf32> -> vector<8x64xf32>
    %cst_3 = arith.constant 0.000000e+00 : f32
    %4 = vector.broadcast %cst_3 : f32 to vector<8x64xf32>
    %5 = arith.maximumf %3, %4 : vector<8x64xf32>
    %6 = arith.truncf %5 : vector<8x64xf32> to vector<8x64xbf16>
    %c0_4 = arith.constant 0 : index
    %c0_5 = arith.constant 0 : index
    %7 = vector.load %arg3[%c0_4, %c0_5] : memref<64x32xbf16, #tpu.memory_space<vmem>>, vector<64x32xbf16>
    %cst_6 = arith.constant dense<0.000000e+00> : vector<8x32xf32>
    %8 = tpu.matmul %6, %7, %cst_6 {dimension_numbers = #tpu.dot_dimension_numbers<[1], [0], [0], [1], [0, 0, 1, 1], [], []>} : vector<8x64xbf16>, vector<64x32xbf16>, vector<8x32xf32> -> vector<8x32xf32>
    %9 = arith.addf %8, %0 : vector<8x32xf32>
    %cst_7 = arith.constant dense<0.000000e+00> : vector<8xf32>
    %10 = vector.multi_reduction <add>, %9, %cst_7 [1] : vector<8x32xf32> to vector<8xf32>
    %11 = vector.shape_cast %10 : vector<8xf32> to vector<8x1xf32>
    %cst_8 = arith.constant 3.200000e+01 : f32
    %12 = vector.broadcast %cst_8 : f32 to vector<8x1xf32>
    %13 = arith.divf %11, %12 : vector<8x1xf32>
    %14 = vector.broadcast %13 : vector<8x1xf32> to vector<8x32xf32>
    %15 = arith.subf %9, %14 : vector<8x32xf32>
    %16 = arith.mulf %15, %15 : vector<8x32xf32>
    %cst_9 = arith.constant dense<0.000000e+00> : vector<8xf32>
    %17 = vector.multi_reduction <add>, %16, %cst_9 [1] : vector<8x32xf32> to vector<8xf32>
    %18 = vector.shape_cast %17 : vector<8xf32> to vector<8x1xf32>
    %cst_10 = arith.constant 3.200000e+01 : f32
    %19 = vector.broadcast %cst_10 : f32 to vector<8x1xf32>
    %20 = arith.divf %18, %19 : vector<8x1xf32>
    %21 = vector.broadcast %13 : vector<8x1xf32> to vector<8x32xf32>
    %22 = arith.subf %9, %21 : vector<8x32xf32>
    %cst_11 = arith.constant 9.99999974E-6 : f32
    %23 = vector.broadcast %cst_11 : f32 to vector<8x1xf32>
    %24 = arith.addf %20, %23 : vector<8x1xf32>
    %25 = math.rsqrt %24 : vector<8x1xf32>
    %26 = vector.broadcast %25 : vector<8x1xf32> to vector<8x32xf32>
    %27 = arith.mulf %22, %26 : vector<8x32xf32>
    %c0_12 = arith.constant 0 : index
    %c0_13 = arith.constant 0 : index
    %28 = vector.load %arg4[%c0_12, %c0_13] : memref<1x32xf32, #tpu.memory_space<vmem>>, vector<1x32xf32>
    %29 = vector.broadcast %28 : vector<1x32xf32> to vector<8x32xf32>
    %30 = arith.mulf %27, %29 : vector<8x32xf32>
    %c0_14 = arith.constant 0 : index
    %c0_15 = arith.constant 0 : index
    %31 = vector.load %arg5[%c0_14, %c0_15] : memref<1x32xf32, #tpu.memory_space<vmem>>, vector<1x32xf32>
    %32 = vector.broadcast %31 : vector<1x32xf32> to vector<8x32xf32>
    %33 = arith.addf %30, %32 : vector<8x32xf32>
    %c0_16 = arith.constant 0 : index
    %c0_17 = arith.constant 0 : index
    %34 = vector.load %arg6[%c0_16, %c0_17] : memref<8x32xf32, #tpu.memory_space<vmem>>, vector<8x32xf32>
    tpu.vector_store %arg6[%c0_16, %c0_17], %33 {strides = array<i32>} : memref<8x32xf32, #tpu.memory_space<vmem>>, vector<8x32xf32>,
    return
  }
  func.func @transform_0(%arg0: i32) -> (i32, i32) {
    %c0_i32 = arith.constant 0 : i32
    %c0_i32_0 = arith.constant 0 : i32
    return %arg0, %c0_i32 : i32, i32
  }
  func.func @transform_1(%arg0: i32) -> (i32, i32) {
    %c0_i32 = arith.constant 0 : i32
    %c0_i32_0 = arith.constant 0 : i32
    %c0_i32_1 = arith.constant 0 : i32
    return %c0_i32, %c0_i32_0 : i32, i32
  }
  func.func @transform_2(%arg0: i32) -> (i32, i32) {
    %c0_i32 = arith.constant 0 : i32
    %c0_i32_0 = arith.constant 0 : i32
    %c0_i32_1 = arith.constant 0 : i32
    return %c0_i32, %c0_i32_0 : i32, i32
  }
  func.func @transform_3(%arg0: i32) -> (i32, i32) {
    %c0_i32 = arith.constant 0 : i32
    %c0_i32_0 = arith.constant 0 : i32
    %c0_i32_1 = arith.constant 0 : i32
    return %c0_i32, %c0_i32_0 : i32, i32
  }
  func.func @transform_4(%arg0: i32) -> (i32, i32) {
    %c0_i32 = arith.constant 0 : i32
    %c0_i32_0 = arith.constant 0 : i32
    %c0_i32_1 = arith.constant 0 : i32
    return %c0_i32, %c0_i32_0 : i32, i32
  }
  func.func @transform_5(%arg0: i32) -> (i32, i32) {
    %c0_i32 = arith.constant 0 : i32
    %c0_i32_0 = arith.constant 0 : i32
    return %arg0, %c0_i32 : i32, i32
  }
}

</mosaic_0001>

<bundles_post_ra>
// kernel: tpu_custom_call.1
= control target key start
LH: loop header
LB: loop body
LE: loop exit
PB: predicated region body
PF: predicated region fallthrough
CT: control target
= control target key end

     0   :  { %10 = vsyncpa [#allocation3], 0  ;;  %s772_s0 = inlined_call_operand.vmem [shape: f32[16,32], index: 0, kind: input, shape index: {}]   ;;  %s773_s1 = inlined_call_operand.vmem [shape: bf16[32,64], index: 1, kind: input, shape index: {}]   ;;  %s774_s2 = inlined_call_operand.vmem [shape: bf16[64,32], index: 2, kind: input, shape index: {}]   ;;  %s775_s3 = inlined_call_operand.vmem [shape: f32[1,32], index: 3, kind: input, shape index: {}]   ;;  %s776_s4 = inlined_call_operand.vmem [shape: f32[1,32], index: 4, kind: input, shape index: {}]   ;;  %s777_s5 = inlined_call_operand.hbm [shape: f32[16,32], index: 5, kind: output, shape index: {}]  }
   0x1   :  { %12 = vsyncpa [#allocation3 + $0x1], 0  ;;  %s657_s18 = smov 0   ;;  %s659_s19 = smov 0  }
   0x2   :  { %s661_s20 = smov 0   ;;  %s663_s21 = smov 0  }
   0x3 LB: > { %s678_s22 = sadd.s32 4294967295, %s622_s21   ;;  %s465_s23 = sadd.s32 4294967294, %s622_s21   ;;  %s622_s21 = sphi %s663_s21, %s783_s21   ;;  %s618_s20 = sphi %s661_s20, %s782_s20   ;;  %s614_s19 = sphi %s659_s19, %s781_s19   ;;  %s610_s18 = sphi %s657_s18, %s780_s18  }
   0x4   : > { %s682_s24 = sadd.s32 1, %s622_s21   ;;  %s135_s25 = sadd.s32 1, %s618_s20 }
   0x5   : > { %s132_s26 = ssub.s32 %s622_s21, %s682_s24  ;;  %p145_p0 = scmp.ne.s32.totalorder %s618_s20, %s614_s19 }
   0x6   : > { %p133_p1 = scmp.eq.s32.totalorder %s132_s26, 0  ;;  %p146_p2 = scmp.eq.s32.totalorder %s678_s22, 1 }
   0x7   : > { %p151_p3 = scmp.ne.s32.totalorder %s614_s19, %s610_s18  ;;  %p152_p4 = scmp.eq.s32.totalorder %s465_s23, 1 }
   0x8   : > { %s693_s27 = scalar_select %p133_p1, %s618_s20, %s135_s25  }
   0x9   : > { %p695_p5 = por %p146_p2, %p145_p0  ;;  %p699_p6 = por %p152_p4, %p151_p3 }
   0xa   : > { %p468_p7 = scmp.ge.s32.totalorder %s622_s21, 1  ;;  %p189_p8 = scmp.lt.s32.totalorder %s622_s21, 3 }
   0xc   : > { %p190_p9 = pnand %p468_p7, %p189_p8 }
   0xd   : > { %p216_p10 = scmp.lt.s32.totalorder (!%p190_p9), %s678_s22, 1  ;;  %s213_s6 = sand.u32 (!%p190_p9), 1, %s614_s19  }
   0xe   : > { %193 = sbr.rel (%p190_p9) target bundleno = 741 (0x2e5), region = 40  ;;  %s469_s7 = sshll.u32 (!%p190_p9), %s213_s6, 3 }
   0xf   : > { %s482_s12 = sshll.u32 (!%p190_p9), %s678_s22, 7  ;;  %s215_s13 = scalar_lea.vmem (!%p190_p9), [#allocation2], %s469_s7 }
  0x10   : > { %s393_s23 = scalar_lea.sflag (!%p190_p9), [#allocation3], %s213_s6  ;;  %s626_s26 = smov (!%p190_p9), [#allocation2]  }
  0x11   : > { %s566_s30 = sshll.u32 (!%p190_p9), %s626_s26, 4  ;;  %s567_s30 = int_to_ptr.vmem [resolvable:$false] %s566_s30 }
  0x13   : > { %v554_v0 = vld [vmem:[%s773_s1 + $0x8] sm:$0xff]   ;;  %v624_v1 = vmov 0.0   ;;  %v555_v2 = vld [vmem:[%s773_s1] sm:$0xff]   ;;  %vm625_vm0 = vmmov 0   ;;  %v556_v3 = vld [vmem:[%s774_s2 + $0x18] sm:$0xff]   ;;  %s217_s11 = scalar_select %p216_p10, %s678_s22, 1 }
  0x14   : > { %493 = vmatprep.subr.bf16.mxu0 %v624_v1  ;;  %501 = vmatprep.subr.bf16.mxu1 %v624_v1  ;;  %v557_v4 = vld [vmem:[%s774_s2 + $0x10] sm:$0xff]   ;;  %vm239_vm1 = vcmask 261120   ;;  %v558_v7 = vld [vmem:[%s774_s2 + $0x8] sm:$0xff]   ;;  %v559_v8 = vld [vmem:[%s774_s2] sm:$0xff]   ;;  %vm317_vm2 = vcmask 523264   ;;  %s568_s22 = scalar_lea.vmem %s567_s30, 256 }
  0x15   : > { %494 = vmatpush3.bf16.msra.mxu0 %v554_v0  ;;  %497 = vmatprep.mubr.msk.bf16.mxu0 %vm625_vm0, %v624_v1  ;;  %s470_s14 = sshll.u32 %s217_s11, 3  ;;  %v479_v30 = vld [vmem:[%s775_s3] ss:$0 sm:$0xff] }
  0x16   : > { %495 = vmatprep.subr.bf16.mxu0 %v624_v1  ;;  %509 = vmatprep.mubr.msk.bf16.mxu1 %vm625_vm0, %v624_v1  ;;  %s219_s17 = scalar_lea.vmem %s772_s0, %s470_s14  ;;  %v480_v32 = vld [vmem:[%s776_s4] ss:$0 sm:$0xff]  ;;  %s406_s14 = sshll.u32 %s215_s13, 4  ;;  %s407_s14 = int_to_ptr.vmem [resolvable:$true] %s406_s14 }
  0x17   : > { %502 = vmatpush3.bf16.msra.mxu1 %v556_v3  ;;  %v221_v5 = vld [vmem:[%s219_s17] sm:$0xff]  ;;  %s404_s17 = scalar_lea.hbm %s777_s5, %s482_s12  ;;  %s562_s25 = scalar_lea.vmem %s407_s14, 128 }
  0x18   : > { %503 = vmatprep.subr.bf16.mxu1 %v624_v1  ;;  %v222_v6 = vpack.c.bf16 %v221_v5, %v221_v5  ;;  %p563_p11 = scmp.ne.s32.totalorder %s407_s14, %s562_s25  ;;  %p569_p0 = scmp.lt.s32.totalorder %s407_s14, %s567_s30 }
  0x19   : > { %496 = vmatpush3.bf16.msra.mxu0 %v555_v2  ;;  %p570_p1 = scmp.lt.s32.totalorder %s568_s22, %s562_s25 }
  0x1a   : > { %p564_p12 = pnand %p563_p11, %p695_p5 }
  0x1b   : > { %504 = vmatpush3.bf16.msra.mxu1 %v557_v4  ;;  %p571_p2 = por %p570_p1, %p569_p0 }
  0x1c   : > { %505 = vmatprep.subr.bf16.mxu1 %v624_v1  ;;  %498 = vmatmul.mubr.msk.bf16.vlgmr.msra.gmra.mxu0 %vm239_vm1, %v222_v6  ;;  %p565_p13 = pneg %p564_p12 }
  0x1e   : > { %p572_p3 = pnand %p571_p2, %p565_p13 }
  0x1f   : > { %506 = vmatpush3.bf16.msra.mxu1 %v558_v7 }
  0x20   : > { %507 = vmatprep.subr.bf16.mxu1 %v624_v1 }
  0x23   : > { %508 = vmatpush3.bf16.msra.mxu1 %v559_v8 }
  0xdc   : > { %v277_v9 = vpop.f32.mrf.mxu0 }
  0xdd   : > { %v283_v10 = vmax.f32 %v277_v9, 0.0 }
  0xde   : > { %v499_v11 = vpop.f32.mrf.mxu0 }
  0xdf   : > { %v284_v12 = vpack.c.bf16 %v283_v10, %v283_v10 }
  0xe0   : > { %v280_v13 = vpop.f32.mrf.mxu0 }
  0xe1   : > { %510 = vmatmul.mubr.msk.bf16.vlgmr.msra.gmra.mxu1 %vm317_vm2, %v284_v12 }
  0xe2   : > { %v500_v14 = vpop.f32.mrf.mxu0 }
 0x1a1   : > { %v355_v15 = vpop.f32.mrf.mxu1 }
 0x1a2   : > { %v356_v16 = vadd.f32 %v355_v15, %v221_v5 }
 0x1a3   : > { %v511_v17 = vpop.f32.mrf.mxu1 }
 0x1a4   : > { %v361_v18 = vsel %vm239_vm1, %v356_v16, 0.0 }
 0x1a5   : > { %362 = vadd.xlane.f32.xlu0 %v361_v18  ;;  %v358_v19 = vpop.f32.mrf.mxu1 }
 0x1a7   : > { %v512_v20 = vpop.f32.mrf.mxu1 }
 0x22e   : > { %v363_v21 = vpop.xlane.xlu0 %362 }
 0x22f   : > { %v365_v22 = vmul.f32 0.03125, %v363_v21 }
 0x231   : > { %v366_v23 = vsub.f32 %v356_v16, %v365_v22 }
 0x233   : > { %v367_v24 = vmul.f32 %v366_v23, %v366_v23 }
 0x235   : > { %v368_v25 = vsel %vm239_vm1, %v367_v24, 0.0 }
 0x236   : > { %369 = vadd.xlane.f32.xlu0 %v368_v25 }
 0x2bf   : > { %v370_v26 = vpop.xlane.xlu0 %369 }
 0x2c0   : > { %v371_v27 = vmul.f32 0.03125, %v370_v26 }
 0x2c2   : > { %v372_v28 = vadd.f32 1e-05, %v371_v27 }
 0x2c4   : > { %560 = vrsqrt.f32 %v372_v28 }
 0x2d1   : > { %v561_v29 = vpop.eup %560 }
 0x2d2   : > { %v374_v31 = vmul.f32 %v561_v29, %v366_v23 }
 0x2d4   : > { %v382_v33 = vmul.f32 %v479_v30, %v374_v31 }
 0x2d6   : > { %v390_v34 = vadd.f32 %v480_v32, %v382_v33 }
 0x2d8   : > { %391 = vst.msk [vmem:[%s215_s13] sm:$0xff] %vm239_vm1, %v390_v34 }
 0x2d9   : > { %575 = shalt.err (!%p572_p3)
}
 0x2da   : > { %s576_s7 = scalar_lea.hbm %s404_s17, 128  ;;  %s580_s9 = scalar_lea.hbm %s777_s5, 256 }
 0x2db   : > { %p577_p4 = scmp.ne.s32.totalorder %s404_s17, %s576_s7  ;;  %p581_p9 = scmp.lt.s32.totalorder %s404_s17, %s777_s5 }
 0x2dc   : > { %p582_p10 = scmp.lt.s32.totalorder %s580_s9, %s576_s7 }
 0x2dd   : > { %p578_p7 = pnand %p577_p4, %p695_p5 }
 0x2de   : > { %p583_p11 = por %p582_p10, %p581_p9 }
 0x2df   : > { %p579_p8 = pneg %p578_p7 }
 0x2e1   : > { %p584_p12 = pnand %p583_p11, %p579_p8 }
 0x2e3   : > { %587 = shalt.err (!%p584_p12)
}
 0x2e4   : > { %513 = dma.vmem_to_hbm [thread:$0]  (%p695_p5), %s407_s14, 128, %s404_s17, %s393_s23  }
 0x2e5 PF: > { %p519_p13 = scmp.ge.s32.totalorder %s622_s21, 2  ;;  %s418_s12 = sand.u32 1, %s610_s18  }
 0x2e6   : > { %s419_s13 = scalar_lea.sflag [#allocation3], %s418_s12 }
 0x2e7   : > { %p516_p0 = pnand %p519_p13, %p699_p6 }
 0x2e9   : > { %p517_p1 = pneg %p516_p0 }
 0x2eb   : > { %605 = dma.done.wait (%p517_p1), %s419_s13, 128  }
 0x2ec   : > { %607 = vsyncadd (%p517_p1), %s419_s13, 4294967168  ;;  %p15_p2 = scmp.ge.s32.totalorder %s682_s24, 4   ;;  %s780_s18 = smov %s614_s19 }
 0x2ed   : > { %s781_s19 = smov %s618_s20  ;;  %s782_s20 = smov %s693_s27 }
 0x2ee   : > { %s783_s21 = smov %s682_s24  ;;  %17 = sbr.rel (!%p15_p2) target bundleno = 3 (0x3), region = 75 }
 0x2f3   :  { %424 = vsyncpa [#allocation3], 1 }
 0x2f4   :  { %426 = vsyncpa [#allocation3 + $0x1], 1 }

</bundles_post_ra>
